<compile_context>
chip_gen: v7x
topology: tpu7x:2x2x1
jax: 0.10.0
libtpu: 0.0.40
codegen_flags: <defaults>
</compile_context>

<pallas_src>
import jax
import jax.numpy as jnp
from jax import lax
from jax.experimental import pallas as pl
from jax.experimental.pallas import tpu as pltpu


def _round_up(x, m):
    return ((x + m - 1) // m) * m


def _lane_tiling(n):
    """(padded extent, tile width) for the j / lane axis (output last dim)."""
    if n <= 64:
        p = _round_up(n, 8)               # tiny problem: single full-extent tile
        return p, p
    n_pad = _round_up(n, 128)             # lane-dense, unmasked vst
    if n_pad <= 1024:
        return n_pad, n_pad               # one wide lane tile
    for tj in (512, 1024, 768, 640, 896, 384, 256):
        if n_pad % tj == 0:
            return n_pad, tj
    # awkward N: a little extra padding buys a 512-wide lane tile
    return _round_up(n, 512), 512


def _sublane_tiling(n):
    """(padded extent, tile height) for the i / sublane axis."""
    n_pad = _round_up(n, 8)
    if n_pad <= 512:
        return n_pad, n_pad               # single row tile
    n_pad = _round_up(n, 128)
    for ti in (256, 512, 384, 128):
        if n_pad % ti == 0:
            return n_pad, ti
    return n_pad, 128                     # unreachable (n_pad is a multiple of 128)


def _mlp_directed_kernel(hi_ref, hjT_ref, w2_ref, b2_ref, out_ref):
    # hi_ref : (1, ti, H)  layer-1 output for row-side nodes (i)
    # hjT_ref: (1, H, tj)  layer-1 output for column-side nodes (j), lane-dense
    # w2_ref : (H,)  SMEM  layer-2 weights
    # b2_ref : (1,)  SMEM  layer-2 bias
    # out_ref: (1, ti, tj)
    _, ti, nhid = hi_ref.shape
    tj = out_ref.shape[2]

    strip = 16 if ti % 16 == 0 else 8      # rows per vreg-resident accumulator
    n_strips = ti // strip
    b2 = b2_ref[0]

    @pl.loop(0, n_strips)
    def _strip(s):
        r0 = pl.multiple_of(s * strip, strip)
        hi_s = hi_ref[0, pl.ds(r0, strip), :]              # (strip, H), vreg-resident
        acc = jnp.zeros((strip, tj), jnp.float32) + b2     # f32 strip accumulator
        # Fused layer 2 on the VPU.  H is small, so a static unroll keeps every
        # slice static (no dynamic lane indexing).
        # TODO(synk): chunk this loop if H ever grows large (code-size / compile time).
        for k in range(nhid):
            hidden = hi_s[:, k:k + 1] + hjT_ref[0, k:k + 1, :]          # (strip, tj)
            acc = acc + w2_ref[k] * jnp.maximum(hidden, 0.0).astype(jnp.float32)
        # Per-strip sigmoid (EUP) overlaps the next strip's VALU work.
        out_ref[0, pl.ds(r0, strip), :] = jax.nn.sigmoid(acc)


def mlp_directed(emb, w1, b1, w2, b2, *, compute_dtype=jnp.float32,
                 slice_output=True):
    """Pallas forward of MLPdirected.  (The PyTorch `adj_in` argument is unused
    by the computation and therefore omitted.)

    emb: (B, N, F) f32; w1: (2F, H); b1: (H,); w2: (H, 1); b2: scalar ().
    compute_dtype: dtype of the fused layer-2 elementwise math (accumulator is
      always f32).  bfloat16 roughly doubles VALU throughput on v6e/v7x; keep
      float32 on v5e (no bf16 VPU) or when tight accuracy is needed.
    slice_output: if False and N needed padding, the padded (B, Np_i, Np_j)
      array is returned so the consumer can slice lazily (avoids an extra HBM
      pass over the result).
    """
    hp = lax.Precision.HIGHEST
    emb = jnp.asarray(emb, jnp.float32)
    w1 = jnp.asarray(w1, jnp.float32)
    b1 = jnp.asarray(b1, jnp.float32)
    w2 = jnp.asarray(w2, jnp.float32)
    b2 = jnp.asarray(b2, jnp.float32)

    batch, n, f = emb.shape
    h = w1.shape[1]

    # ---- tiling / padding ----------------------------------------------------
    n_pad_i, ti = _sublane_tiling(n)
    n_pad_j, tj = _lane_tiling(n)
    # v7x has 2 TensorCores: make sure the parallel grid has at least 2 steps.
    if batch * (n_pad_i // ti) * (n_pad_j // tj) < 2 and n_pad_i > 8:
        n_pad_i = _round_up(n_pad_i, 16)
        ti = n_pad_i // 2

    # ---- layer 1 hoisted out of the grid (computed once, O(B*N*H)) -----------
    w1a = w1[:f]                                   # (F, H): acts on emb[i]
    w1b = w1[f:]                                   # (F, H): acts on emb[j]
    hi = jnp.dot(emb, w1a, precision=hp) + b1                    # (B, N, H)
    hjT = jnp.einsum('bnf,fh->bhn', emb, w1b, precision=hp)      # (B, H, N), j lane-dense
    if n_pad_i != n:
        hi = jnp.pad(hi, ((0, 0), (0, n_pad_i - n), (0, 0)))
    if n_pad_j != n:
        hjT = jnp.pad(hjT, ((0, 0), (0, 0), (0, n_pad_j - n)))

    cdt = jnp.dtype(compute_dtype)
    if cdt != jnp.dtype(jnp.float32):
        hi = hi.astype(cdt)                        # halves DMA + VALU packing (v6e/v7x)
        hjT = hjT.astype(cdt)

    # ---- VMEM budget: double-buffered in/out tiles + headroom, capped for v7x.
    tile_bytes = 2 * ((ti * h + h * tj) * hi.dtype.itemsize + ti * tj * 4)
    vmem_limit = int(min(48 * 2 ** 20, max(16 * 2 ** 20, 4 * tile_bytes)))

    grid = (batch, n_pad_i // ti, n_pad_j // tj)
    out = pl.pallas_call(
        _mlp_directed_kernel,
        out_shape=jax.ShapeDtypeStruct((batch, n_pad_i, n_pad_j), jnp.float32),
        grid_spec=pltpu.PrefetchScalarGridSpec(
            num_scalar_prefetch=0,
            grid=grid,
            in_specs=[
                pl.BlockSpec((1, ti, h), lambda b, i, j: (b, i, 0)),   # hi rows (i)
                pl.BlockSpec((1, h, tj), lambda b, i, j: (b, 0, j)),   # hjT cols (j)
                pl.BlockSpec(memory_space=pltpu.MemorySpace.SMEM),     # w2 (H,)
                pl.BlockSpec(memory_space=pltpu.MemorySpace.SMEM),     # b2 (1,)
            ],
            out_specs=pl.BlockSpec((1, ti, tj), lambda b, i, j: (b, i, j)),
        ),
        compiler_params=pltpu.CompilerParams(
            dimension_semantics=("parallel", "parallel", "parallel"),
            vmem_limit_bytes=vmem_limit,
        ),
    )(hi, hjT, w2.reshape(h), b2.reshape(1))

    if slice_output and (n_pad_i != n or n_pad_j != n):
        out = out[:, :n, :n]
    return out


def mlp_directed_reference(emb, w1, b1, w2, b2):
    """Pure-JAX reference matching the PyTorch forward exactly."""
    hp = lax.Precision.HIGHEST
    batch, n, f = emb.shape
    a = jnp.broadcast_to(emb[:, :, None, :], (batch, n, n, f))
    b = jnp.broadcast_to(emb[:, None, :, :], (batch, n, n, f))
    cart = jnp.concatenate([a, b], axis=-1).reshape(batch * n * n, 2 * f)
    edge = jax.nn.relu(jnp.dot(cart, w1, precision=hp) + b1)      # (B*N*N, H)
    adj = (jnp.dot(edge, w2, precision=hp) + b2).reshape(batch, n, n)
    return jax.nn.sigmoid(adj)


if __name__ == "__main__":
    # Small shapes consistent with the module: emb_in is (batch, nb_node, fmap).
    batch, nb_node, fmaps, nb_hidden = 2, 8, 4, 32

    key = jax.random.PRNGKey(0)
    k_emb, k_w1, k_b1, k_w2, k_b2, k_emb2, k_emb3 = jax.random.split(key, 7)

    emb_in = jax.random.normal(k_emb, (batch, nb_node, fmaps), jnp.float32)
    # adj_in is accepted by the PyTorch forward but never used in the compute.

    # Deterministic synthetic parameters (layer1: Linear(2F, H), layer2: Linear(H, 1)).
    w1 = jax.random.normal(k_w1, (2 * fmaps, nb_hidden), jnp.float32) * 0.1
    b1 = jax.random.normal(k_b1, (nb_hidden,), jnp.float32) * 0.1
    w2 = jax.random.normal(k_w2, (nb_hidden, 1), jnp.float32) * 0.1
    b2 = jax.random.normal(k_b2, (), jnp.float32) * 0.1

    # 1) tiny single-tile path.
    adj = jax.block_until_ready(mlp_directed(emb_in, w1, b1, w2, b2))
    ref = mlp_directed_reference(emb_in, w1, b1, w2, b2)
    assert adj.shape == (batch, nb_node, nb_node)
    assert jnp.allclose(adj, ref, atol=1e-5, rtol=1e-5)

    # 2) node count that needs padding (exercises pad + slice path).
    emb13 = jax.random.normal(k_emb2, (batch, 13, fmaps), jnp.float32)
    adj13 = jax.block_until_ready(mlp_directed(emb13, w1, b1, w2, b2))
    ref13 = mlp_directed_reference(emb13, w1, b1, w2, b2)
    assert adj13.shape == (batch, 13, 13)
    assert jnp.allclose(adj13, ref13, atol=1e-5, rtol=1e-5)

    # 3) lane-dense 128-padded j axis + multi-strip pl.loop path.
    emb136 = jax.random.normal(k_emb3, (batch, 136, fmaps), jnp.float32)
    adj136 = jax.block_until_ready(mlp_directed(emb136, w1, b1, w2, b2))
    ref136 = mlp_directed_reference(emb136, w1, b1, w2, b2)
    assert adj136.shape == (batch, 136, 136)
    assert jnp.allclose(adj136, ref136, atol=1e-5, rtol=1e-5)

    # 4) bf16 elementwise path (review: VALU packing on v6e/v7x only); looser tol.
    kind = jax.devices()[0].device_kind.lower()
    if not any(tag in kind for tag in ("v2", "v3", "v4", "v5")):
        adj_bf16 = jax.block_until_ready(
            mlp_directed(emb136, w1, b1, w2, b2, compute_dtype=jnp.bfloat16))
        assert adj_bf16.shape == (batch, 136, 136)
        assert jnp.allclose(adj_bf16, ref136, atol=2e-2)

    print("KERNEL_OK")
</pallas_src>

<mosaic_0001>
module attributes {stable_mosaic.version = 11 : i64} {
  func.func @_mlp_directed_kernel(%arg0: i32, %arg1: i32, %arg2: i32, %arg3: memref<1x8x32xf32, #tpu.memory_space<vmem>>, %arg4: memref<1x32x8xf32, #tpu.memory_space<vmem>>, %arg5: memref<32xf32, #tpu.memory_space<smem>>, %arg6: memref<1xf32, #tpu.memory_space<smem>>, %arg7: memref<1x8x8xf32, #tpu.memory_space<vmem>>) attributes {dimension_semantics = [#tpu.dimension_semantics<parallel>, #tpu.dimension_semantics<parallel>, #tpu.dimension_semantics<parallel>], iteration_bounds = array<i64: 2, 1, 1>, scalar_prefetch = 0 : i64, scratch_operands = 0 : i64, tpu.core_type = #tpu.core_type<tc>, window_params = [{transform_indices = @transform_0, window_bounds = array<i64: 1, 8, 32>}, {transform_indices = @transform_1, window_bounds = array<i64: 1, 32, 8>}, {transform_indices = @transform_2, window_bounds = array<i64: 32>}, {transform_indices = @transform_3, window_bounds = array<i64: 1>}, {transform_indices = @transform_4, window_bounds = array<i64: 1, 8, 8>}]} {
    %c0 = arith.constant 0 : index
    %0 = memref.load %arg6[%c0] : memref<1xf32, #tpu.memory_space<smem>>
    %c0_i32 = arith.constant 0 : i32
    %c1_i32 = arith.constant 1 : i32
    %1 = arith.muli %c0_i32, %c1_i32 : i32
    %c0_i32_0 = arith.constant 0 : i32
    %2 = arith.addi %c0_i32_0, %1 : i32
    %c8_i32 = arith.constant 8 : i32
    %3 = arith.muli %2, %c8_i32 : i32
    %4 = tpu.assume_multiple %3, 8 : i32
    %c0_1 = arith.constant 0 : index
    %5 = arith.index_cast %4 : i32 to index
    %c0_2 = arith.constant 0 : index
    %6 = vector.load %arg3[%c0_1, %5, %c0_2] : memref<1x8x32xf32, #tpu.memory_space<vmem>>, vector<1x8x32xf32>
    %7 = vector.shape_cast %6 : vector<1x8x32xf32> to vector<8x32xf32>
    %cst = arith.constant 0.000000e+00 : f32
    %8 = vector.broadcast %cst : f32 to vector<8x8xf32>
    %9 = vector.broadcast %0 : f32 to vector<8x8xf32>
    %10 = arith.addf %8, %9 : vector<8x8xf32>
    %11 = vector.extract_strided_slice %7 {offsets = [0, 0], sizes = [8, 1], strides = [1, 1]} : vector<8x32xf32> to vector<8x1xf32>
    %c0_3 = arith.constant 0 : index
    %c0_4 = arith.constant 0 : index
    %c0_5 = arith.constant 0 : index
    %12 = vector.load %arg4[%c0_3, %c0_4, %c0_5] : memref<1x32x8xf32, #tpu.memory_space<vmem>>, vector<1x1x8xf32>
    %13 = vector.shape_cast %12 : vector<1x1x8xf32> to vector<1x8xf32>
    %14 = vector.broadcast %11 : vector<8x1xf32> to vector<8x8xf32>
    %15 = vector.broadcast %13 : vector<1x8xf32> to vector<8x8xf32>
    %16 = arith.addf %14, %15 : vector<8x8xf32>
    %c0_6 = arith.constant 0 : index
    %17 = memref.load %arg5[%c0_6] : memref<32xf32, #tpu.memory_space<smem>>
    %cst_7 = arith.constant 0.000000e+00 : f32
    %18 = vector.broadcast %cst_7 : f32 to vector<8x8xf32>
    %19 = arith.maximumf %16, %18 : vector<8x8xf32>
    %20 = vector.broadcast %17 : f32 to vector<8x8xf32>
    %21 = arith.mulf %20, %19 : vector<8x8xf32>
    %22 = arith.addf %10, %21 : vector<8x8xf32>
    %23 = vector.extract_strided_slice %7 {offsets = [0, 1], sizes = [8, 1], strides = [1, 1]} : vector<8x32xf32> to vector<8x1xf32>
    %c0_8 = arith.constant 0 : index
    %c1 = arith.constant 1 : index
    %c0_9 = arith.constant 0 : index
    %24 = vector.load %arg4[%c0_8, %c1, %c0_9] : memref<1x32x8xf32, #tpu.memory_space<vmem>>, vector<1x1x8xf32>
    %25 = vector.shape_cast %24 : vector<1x1x8xf32> to vector<1x8xf32>
    %26 = vector.broadcast %23 : vector<8x1xf32> to vector<8x8xf32>
    %27 = vector.broadcast %25 : vector<1x8xf32> to vector<8x8xf32>
    %28 = arith.addf %26, %27 : vector<8x8xf32>
    %c1_10 = arith.constant 1 : index
    %29 = memref.load %arg5[%c1_10] : memref<32xf32, #tpu.memory_space<smem>>
    %cst_11 = arith.constant 0.000000e+00 : f32
    %30 = vector.broadcast %cst_11 : f32 to vector<8x8xf32>
    %31 = arith.maximumf %28, %30 : vector<8x8xf32>
    %32 = vector.broadcast %29 : f32 to vector<8x8xf32>
    %33 = arith.mulf %32, %31 : vector<8x8xf32>
    %34 = arith.addf %22, %33 : vector<8x8xf32>
    %35 = vector.extract_strided_slice %7 {offsets = [0, 2], sizes = [8, 1], strides = [1, 1]} : vector<8x32xf32> to vector<8x1xf32>
    %c0_12 = arith.constant 0 : index
    %c2 = arith.constant 2 : index
    %c0_13 = arith.constant 0 : index
    %36 = vector.load %arg4[%c0_12, %c2, %c0_13] : memref<1x32x8xf32, #tpu.memory_space<vmem>>, vector<1x1x8xf32>
    %37 = vector.shape_cast %36 : vector<1x1x8xf32> to vector<1x8xf32>
    %38 = vector.broadcast %35 : vector<8x1xf32> to vector<8x8xf32>
    %39 = vector.broadcast %37 : vector<1x8xf32> to vector<8x8xf32>
    %40 = arith.addf %38, %39 : vector<8x8xf32>
    %c2_14 = arith.constant 2 : index
    %41 = memref.load %arg5[%c2_14] : memref<32xf32, #tpu.memory_space<smem>>
    %cst_15 = arith.constant 0.000000e+00 : f32
    %42 = vector.broadcast %cst_15 : f32 to vector<8x8xf32>
    %43 = arith.maximumf %40, %42 : vector<8x8xf32>
    %44 = vector.broadcast %41 : f32 to vector<8x8xf32>
    %45 = arith.mulf %44, %43 : vector<8x8xf32>
    %46 = arith.addf %34, %45 : vector<8x8xf32>
    %47 = vector.extract_strided_slice %7 {offsets = [0, 3], sizes = [8, 1], strides = [1, 1]} : vector<8x32xf32> to vector<8x1xf32>
    %c0_16 = arith.constant 0 : index
    %c3 = arith.constant 3 : index
    %c0_17 = arith.constant 0 : index
    %48 = vector.load %arg4[%c0_16, %c3, %c0_17] : memref<1x32x8xf32, #tpu.memory_space<vmem>>, vector<1x1x8xf32>
    %49 = vector.shape_cast %48 : vector<1x1x8xf32> to vector<1x8xf32>
    %50 = vector.broadcast %47 : vector<8x1xf32> to vector<8x8xf32>
    %51 = vector.broadcast %49 : vector<1x8xf32> to vector<8x8xf32>
    %52 = arith.addf %50, %51 : vector<8x8xf32>
    %c3_18 = arith.constant 3 : index
    %53 = memref.load %arg5[%c3_18] : memref<32xf32, #tpu.memory_space<smem>>
    %cst_19 = arith.constant 0.000000e+00 : f32
    %54 = vector.broadcast %cst_19 : f32 to vector<8x8xf32>
    %55 = arith.maximumf %52, %54 : vector<8x8xf32>
    %56 = vector.broadcast %53 : f32 to vector<8x8xf32>
    %57 = arith.mulf %56, %55 : vector<8x8xf32>
    %58 = arith.addf %46, %57 : vector<8x8xf32>
    %59 = vector.extract_strided_slice %7 {offsets = [0, 4], sizes = [8, 1], strides = [1, 1]} : vector<8x32xf32> to vector<8x1xf32>
    %c0_20 = arith.constant 0 : index
    %c4 = arith.constant 4 : index
    %c0_21 = arith.constant 0 : index
    %60 = vector.load %arg4[%c0_20, %c4, %c0_21] : memref<1x32x8xf32, #tpu.memory_space<vmem>>, vector<1x1x8xf32>
    %61 = vector.shape_cast %60 : vector<1x1x8xf32> to vector<1x8xf32>
    %62 = vector.broadcast %59 : vector<8x1xf32> to vector<8x8xf32>
    %63 = vector.broadcast %61 : vector<1x8xf32> to vector<8x8xf32>
    %64 = arith.addf %62, %63 : vector<8x8xf32>
    %c4_22 = arith.constant 4 : index
    %65 = memref.load %arg5[%c4_22] : memref<32xf32, #tpu.memory_space<smem>>
    %cst_23 = arith.constant 0.000000e+00 : f32
    %66 = vector.broadcast %cst_23 : f32 to vector<8x8xf32>
    %67 = arith.maximumf %64, %66 : vector<8x8xf32>
    %68 = vector.broadcast %65 : f32 to vector<8x8xf32>
    %69 = arith.mulf %68, %67 : vector<8x8xf32>
    %70 = arith.addf %58, %69 : vector<8x8xf32>
    %71 = vector.extract_strided_slice %7 {offsets = [0, 5], sizes = [8, 1], strides = [1, 1]} : vector<8x32xf32> to vector<8x1xf32>
    %c0_24 = arith.constant 0 : index
    %c5 = arith.constant 5 : index
    %c0_25 = arith.constant 0 : index
    %72 = vector.load %arg4[%c0_24, %c5, %c0_25] : memref<1x32x8xf32, #tpu.memory_space<vmem>>, vector<1x1x8xf32>
    %73 = vector.shape_cast %72 : vector<1x1x8xf32> to vector<1x8xf32>
    %74 = vector.broadcast %71 : vector<8x1xf32> to vector<8x8xf32>
    %75 = vector.broadcast %73 : vector<1x8xf32> to vector<8x8xf32>
    %76 = arith.addf %74, %75 : vector<8x8xf32>
    %c5_26 = arith.constant 5 : index
    %77 = memref.load %arg5[%c5_26] : memref<32xf32, #tpu.memory_space<smem>>
    %cst_27 = arith.constant 0.000000e+00 : f32
    %78 = vector.broadcast %cst_27 : f32 to vector<8x8xf32>
    %79 = arith.maximumf %76, %78 : vector<8x8xf32>
    %80 = vector.broadcast %77 : f32 to vector<8x8xf32>
    %81 = arith.mulf %80, %79 : vector<8x8xf32>
    %82 = arith.addf %70, %81 : vector<8x8xf32>
    %83 = vector.extract_strided_slice %7 {offsets = [0, 6], sizes = [8, 1], strides = [1, 1]} : vector<8x32xf32> to vector<8x1xf32>
    %c0_28 = arith.constant 0 : index
    %c6 = arith.constant 6 : index
    %c0_29 = arith.constant 0 : index
    %84 = vector.load %arg4[%c0_28, %c6, %c0_29] : memref<1x32x8xf32, #tpu.memory_space<vmem>>, vector<1x1x8xf32>
    %85 = vector.shape_cast %84 : vector<1x1x8xf32> to vector<1x8xf32>
    %86 = vector.broadcast %83 : vector<8x1xf32> to vector<8x8xf32>
    %87 = vector.broadcast %85 : vector<1x8xf32> to vector<8x8xf32>
    %88 = arith.addf %86, %87 : vector<8x8xf32>
    %c6_30 = arith.constant 6 : index
    %89 = memref.load %arg5[%c6_30] : memref<32xf32, #tpu.memory_space<smem>>
    %cst_31 = arith.constant 0.000000e+00 : f32
    %90 = vector.broadcast %cst_31 : f32 to vector<8x8xf32>
    %91 = arith.maximumf %88, %90 : vector<8x8xf32>
    %92 = vector.broadcast %89 : f32 to vector<8x8xf32>
    %93 = arith.mulf %92, %91 : vector<8x8xf32>
    %94 = arith.addf %82, %93 : vector<8x8xf32>
    %95 = vector.extract_strided_slice %7 {offsets = [0, 7], sizes = [8, 1], strides = [1, 1]} : vector<8x32xf32> to vector<8x1xf32>
    %c0_32 = arith.constant 0 : index
    %c7 = arith.constant 7 : index
    %c0_33 = arith.constant 0 : index
    %96 = vector.load %arg4[%c0_32, %c7, %c0_33] : memref<1x32x8xf32, #tpu.memory_space<vmem>>, vector<1x1x8xf32>
    %97 = vector.shape_cast %96 : vector<1x1x8xf32> to vector<1x8xf32>
    %98 = vector.broadcast %95 : vector<8x1xf32> to vector<8x8xf32>
    %99 = vector.broadcast %97 : vector<1x8xf32> to vector<8x8xf32>
    %100 = arith.addf %98, %99 : vector<8x8xf32>
    %c7_34 = arith.constant 7 : index
    %101 = memref.load %arg5[%c7_34] : memref<32xf32, #tpu.memory_space<smem>>
    %cst_35 = arith.constant 0.000000e+00 : f32
    %102 = vector.broadcast %cst_35 : f32 to vector<8x8xf32>
    %103 = arith.maximumf %100, %102 : vector<8x8xf32>
    %104 = vector.broadcast %101 : f32 to vector<8x8xf32>
    %105 = arith.mulf %104, %103 : vector<8x8xf32>
    %106 = arith.addf %94, %105 : vector<8x8xf32>
    %107 = vector.extract_strided_slice %7 {offsets = [0, 8], sizes = [8, 1], strides = [1, 1]} : vector<8x32xf32> to vector<8x1xf32>
    %c0_36 = arith.constant 0 : index
    %c8 = arith.constant 8 : index
    %c0_37 = arith.constant 0 : index
    %108 = vector.load %arg4[%c0_36, %c8, %c0_37] : memref<1x32x8xf32, #tpu.memory_space<vmem>>, vector<1x1x8xf32>
    %109 = vector.shape_cast %108 : vector<1x1x8xf32> to vector<1x8xf32>
    %110 = vector.broadcast %107 : vector<8x1xf32> to vector<8x8xf32>
    %111 = vector.broadcast %109 : vector<1x8xf32> to vector<8x8xf32>
    %112 = arith.addf %110, %111 : vector<8x8xf32>
    %c8_38 = arith.constant 8 : index
    %113 = memref.load %arg5[%c8_38] : memref<32xf32, #tpu.memory_space<smem>>
    %cst_39 = arith.constant 0.000000e+00 : f32
    %114 = vector.broadcast %cst_39 : f32 to vector<8x8xf32>
    %115 = arith.maximumf %112, %114 : vector<8x8xf32>
    %116 = vector.broadcast %113 : f32 to vector<8x8xf32>
    %117 = arith.mulf %116, %115 : vector<8x8xf32>
    %118 = arith.addf %106, %117 : vector<8x8xf32>
    %119 = vector.extract_strided_slice %7 {offsets = [0, 9], sizes = [8, 1], strides = [1, 1]} : vector<8x32xf32> to vector<8x1xf32>
    %c0_40 = arith.constant 0 : index
    %c9 = arith.constant 9 : index
    %c0_41 = arith.constant 0 : index
    %120 = vector.load %arg4[%c0_40, %c9, %c0_41] : memref<1x32x8xf32, #tpu.memory_space<vmem>>, vector<1x1x8xf32>
    %121 = vector.shape_cast %120 : vector<1x1x8xf32> to vector<1x8xf32>
    %122 = vector.broadcast %119 : vector<8x1xf32> to vector<8x8xf32>
    %123 = vector.broadcast %121 : vector<1x8xf32> to vector<8x8xf32>
    %124 = arith.addf %122, %123 : vector<8x8xf32>
    %c9_42 = arith.constant 9 : index
    %125 = memref.load %arg5[%c9_42] : memref<32xf32, #tpu.memory_space<smem>>
    %cst_43 = arith.constant 0.000000e+00 : f32
    %126 = vector.broadcast %cst_43 : f32 to vector<8x8xf32>
    %127 = arith.maximumf %124, %126 : vector<8x8xf32>
    %128 = vector.broadcast %125 : f32 to vector<8x8xf32>
    %129 = arith.mulf %128, %127 : vector<8x8xf32>
    %130 = arith.addf %118, %129 : vector<8x8xf32>
    %131 = vector.extract_strided_slice %7 {offsets = [0, 10], sizes = [8, 1], strides = [1, 1]} : vector<8x32xf32> to vector<8x1xf32>
    %c0_44 = arith.constant 0 : index
    %c10 = arith.constant 10 : index
    %c0_45 = arith.constant 0 : index
    %132 = vector.load %arg4[%c0_44, %c10, %c0_45] : memref<1x32x8xf32, #tpu.memory_space<vmem>>, vector<1x1x8xf32>
    %133 = vector.shape_cast %132 : vector<1x1x8xf32> to vector<1x8xf32>
    %134 = vector.broadcast %131 : vector<8x1xf32> to vector<8x8xf32>
    %135 = vector.broadcast %133 : vector<1x8xf32> to vector<8x8xf32>
    %136 = arith.addf %134, %135 : vector<8x8xf32>
    %c10_46 = arith.constant 10 : index
    %137 = memref.load %arg5[%c10_46] : memref<32xf32, #tpu.memory_space<smem>>
    %cst_47 = arith.constant 0.000000e+00 : f32
    %138 = vector.broadcast %cst_47 : f32 to vector<8x8xf32>
    %139 = arith.maximumf %136, %138 : vector<8x8xf32>
    %140 = vector.broadcast %137 : f32 to vector<8x8xf32>
    %141 = arith.mulf %140, %139 : vector<8x8xf32>
    %142 = arith.addf %130, %141 : vector<8x8xf32>
    %143 = vector.extract_strided_slice %7 {offsets = [0, 11], sizes = [8, 1], strides = [1, 1]} : vector<8x32xf32> to vector<8x1xf32>
    %c0_48 = arith.constant 0 : index
    %c11 = arith.constant 11 : index
    %c0_49 = arith.constant 0 : index
    %144 = vector.load %arg4[%c0_48, %c11, %c0_49] : memref<1x32x8xf32, #tpu.memory_space<vmem>>, vector<1x1x8xf32>
    %145 = vector.shape_cast %144 : vector<1x1x8xf32> to vector<1x8xf32>
    %146 = vector.broadcast %143 : vector<8x1xf32> to vector<8x8xf32>
    %147 = vector.broadcast %145 : vector<1x8xf32> to vector<8x8xf32>
    %148 = arith.addf %146, %147 : vector<8x8xf32>
    %c11_50 = arith.constant 11 : index
    %149 = memref.load %arg5[%c11_50] : memref<32xf32, #tpu.memory_space<smem>>
    %cst_51 = arith.constant 0.000000e+00 : f32
    %150 = vector.broadcast %cst_51 : f32 to vector<8x8xf32>
    %151 = arith.maximumf %148, %150 : vector<8x8xf32>
    %152 = vector.broadcast %149 : f32 to vector<8x8xf32>
    %153 = arith.mulf %152, %151 : vector<8x8xf32>
    %154 = arith.addf %142, %153 : vector<8x8xf32>
    %155 = vector.extract_strided_slice %7 {offsets = [0, 12], sizes = [8, 1], strides = [1, 1]} : vector<8x32xf32> to vector<8x1xf32>
    %c0_52 = arith.constant 0 : index
    %c12 = arith.constant 12 : index
    %c0_53 = arith.constant 0 : index
    %156 = vector.load %arg4[%c0_52, %c12, %c0_53] : memref<1x32x8xf32, #tpu.memory_space<vmem>>, vector<1x1x8xf32>
    %157 = vector.shape_cast %156 : vector<1x1x8xf32> to vector<1x8xf32>
    %158 = vector.broadcast %155 : vector<8x1xf32> to vector<8x8xf32>
    %159 = vector.broadcast %157 : vector<1x8xf32> to vector<8x8xf32>
    %160 = arith.addf %158, %159 : vector<8x8xf32>
    %c12_54 = arith.constant 12 : index
    %161 = memref.load %arg5[%c12_54] : memref<32xf32, #tpu.memory_space<smem>>
    %cst_55 = arith.constant 0.000000e+00 : f32
    %162 = vector.broadcast %cst_55 : f32 to vector<8x8xf32>
    %163 = arith.maximumf %160, %162 : vector<8x8xf32>
    %164 = vector.broadcast %161 : f32 to vector<8x8xf32>
    %165 = arith.mulf %164, %163 : vector<8x8xf32>
    %166 = arith.addf %154, %165 : vector<8x8xf32>
    %167 = vector.extract_strided_slice %7 {offsets = [0, 13], sizes = [8, 1], strides = [1, 1]} : vector<8x32xf32> to vector<8x1xf32>
    %c0_56 = arith.constant 0 : index
    %c13 = arith.constant 13 : index
    %c0_57 = arith.constant 0 : index
    %168 = vector.load %arg4[%c0_56, %c13, %c0_57] : memref<1x32x8xf32, #tpu.memory_space<vmem>>, vector<1x1x8xf32>
    %169 = vector.shape_cast %168 : vector<1x1x8xf32> to vector<1x8xf32>
    %170 = vector.broadcast %167 : vector<8x1xf32> to vector<8x8xf32>
    %171 = vector.broadcast %169 : vector<1x8xf32> to vector<8x8xf32>
    %172 = arith.addf %170, %171 : vector<8x8xf32>
    %c13_58 = arith.constant 13 : index
    %173 = memref.load %arg5[%c13_58] : memref<32xf32, #tpu.memory_space<smem>>
    %cst_59 = arith.constant 0.000000e+00 : f32
    %174 = vector.broadcast %cst_59 : f32 to vector<8x8xf32>
    %175 = arith.maximumf %172, %174 : vector<8x8xf32>
    %176 = vector.broadcast %173 : f32 to vector<8x8xf32>
    %177 = arith.mulf %176, %175 : vector<8x8xf32>
    %178 = arith.addf %166, %177 : vector<8x8xf32>
    %179 = vector.extract_strided_slice %7 {offsets = [0, 14], sizes = [8, 1], strides = [1, 1]} : vector<8x32xf32> to vector<8x1xf32>
    %c0_60 = arith.constant 0 : index
    %c14 = arith.constant 14 : index
    %c0_61 = arith.constant 0 : index
    %180 = vector.load %arg4[%c0_60, %c14, %c0_61] : memref<1x32x8xf32, #tpu.memory_space<vmem>>, vector<1x1x8xf32>
    %181 = vector.shape_cast %180 : vector<1x1x8xf32> to vector<1x8xf32>
    %182 = vector.broadcast %179 : vector<8x1xf32> to vector<8x8xf32>
    %183 = vector.broadcast %181 : vector<1x8xf32> to vector<8x8xf32>
    %184 = arith.addf %182, %183 : vector<8x8xf32>
    %c14_62 = arith.constant 14 : index
    %185 = memref.load %arg5[%c14_62] : memref<32xf32, #tpu.memory_space<smem>>
    %cst_63 = arith.constant 0.000000e+00 : f32
    %186 = vector.broadcast %cst_63 : f32 to vector<8x8xf32>
    %187 = arith.maximumf %184, %186 : vector<8x8xf32>
    %188 = vector.broadcast %185 : f32 to vector<8x8xf32>
    %189 = arith.mulf %188, %187 : vector<8x8xf32>
    %190 = arith.addf %178, %189 : vector<8x8xf32>
    %191 = vector.extract_strided_slice %7 {offsets = [0, 15], sizes = [8, 1], strides = [1, 1]} : vector<8x32xf32> to vector<8x1xf32>
    %c0_64 = arith.constant 0 : index
    %c15 = arith.constant 15 : index
    %c0_65 = arith.constant 0 : index
    %192 = vector.load %arg4[%c0_64, %c15, %c0_65] : memref<1x32x8xf32, #tpu.memory_space<vmem>>, vector<1x1x8xf32>
    %193 = vector.shape_cast %192 : vector<1x1x8xf32> to vector<1x8xf32>
    %194 = vector.broadcast %191 : vector<8x1xf32> to vector<8x8xf32>
    %195 = vector.broadcast %193 : vector<1x8xf32> to vector<8x8xf32>
    %196 = arith.addf %194, %195 : vector<8x8xf32>
    %c15_66 = arith.constant 15 : index
    %197 = memref.load %arg5[%c15_66] : memref<32xf32, #tpu.memory_space<smem>>
    %cst_67 = arith.constant 0.000000e+00 : f32
    %198 = vector.broadcast %cst_67 : f32 to vector<8x8xf32>
    %199 = arith.maximumf %196, %198 : vector<8x8xf32>
    %200 = vector.broadcast %197 : f32 to vector<8x8xf32>
    %201 = arith.mulf %200, %199 : vector<8x8xf32>
    %202 = arith.addf %190, %201 : vector<8x8xf32>
    %203 = vector.extract_strided_slice %7 {offsets = [0, 16], sizes = [8, 1], strides = [1, 1]} : vector<8x32xf32> to vector<8x1xf32>
    %c0_68 = arith.constant 0 : index
    %c16 = arith.constant 16 : index
    %c0_69 = arith.constant 0 : index
    %204 = vector.load %arg4[%c0_68, %c16, %c0_69] : memref<1x32x8xf32, #tpu.memory_space<vmem>>, vector<1x1x8xf32>
    %205 = vector.shape_cast %204 : vector<1x1x8xf32> to vector<1x8xf32>
    %206 = vector.broadcast %203 : vector<8x1xf32> to vector<8x8xf32>
    %207 = vector.broadcast %205 : vector<1x8xf32> to vector<8x8xf32>
    %208 = arith.addf %206, %207 : vector<8x8xf32>
    %c16_70 = arith.constant 16 : index
    %209 = memref.load %arg5[%c16_70] : memref<32xf32, #tpu.memory_space<smem>>
    %cst_71 = arith.constant 0.000000e+00 : f32
    %210 = vector.broadcast %cst_71 : f32 to vector<8x8xf32>
    %211 = arith.maximumf %208, %210 : vector<8x8xf32>
    %212 = vector.broadcast %209 : f32 to vector<8x8xf32>
    %213 = arith.mulf %212, %211 : vector<8x8xf32>
    %214 = arith.addf %202, %213 : vector<8x8xf32>
    %215 = vector.extract_strided_slice %7 {offsets = [0, 17], sizes = [8, 1], strides = [1, 1]} : vector<8x32xf32> to vector<8x1xf32>
    %c0_72 = arith.constant 0 : index
    %c17 = arith.constant 17 : index
    %c0_73 = arith.constant 0 : index
    %216 = vector.load %arg4[%c0_72, %c17, %c0_73] : memref<1x32x8xf32, #tpu.memory_space<vmem>>, vector<1x1x8xf32>
    %217 = vector.shape_cast %216 : vector<1x1x8xf32> to vector<1x8xf32>
    %218 = vector.broadcast %215 : vector<8x1xf32> to vector<8x8xf32>
    %219 = vector.broadcast %217 : vector<1x8xf32> to vector<8x8xf32>
    %220 = arith.addf %218, %219 : vector<8x8xf32>
    %c17_74 = arith.constant 17 : index
    %221 = memref.load %arg5[%c17_74] : memref<32xf32, #tpu.memory_space<smem>>
    %cst_75 = arith.constant 0.000000e+00 : f32
    %222 = vector.broadcast %cst_75 : f32 to vector<8x8xf32>
    %223 = arith.maximumf %220, %222 : vector<8x8xf32>
    %224 = vector.broadcast %221 : f32 to vector<8x8xf32>
    %225 = arith.mulf %224, %223 : vector<8x8xf32>
    %226 = arith.addf %214, %225 : vector<8x8xf32>
    %227 = vector.extract_strided_slice %7 {offsets = [0, 18], sizes = [8, 1], strides = [1, 1]} : vector<8x32xf32> to vector<8x1xf32>
    %c0_76 = arith.constant 0 : index
    %c18 = arith.constant 18 : index
    %c0_77 = arith.constant 0 : index
    %228 = vector.load %arg4[%c0_76, %c18, %c0_77] : memref<1x32x8xf32, #tpu.memory_space<vmem>>, vector<1x1x8xf32>
    %229 = vector.shape_cast %228 : vector<1x1x8xf32> to vector<1x8xf32>
    %230 = vector.broadcast %227 : vector<8x1xf32> to vector<8x8xf32>
    %231 = vector.broadcast %229 : vector<1x8xf32> to vector<8x8xf32>
    %232 = arith.addf %230, %231 : vector<8x8xf32>
    %c18_78 = arith.constant 18 : index
    %233 = memref.load %arg5[%c18_78] : memref<32xf32, #tpu.memory_space<smem>>
    %cst_79 = arith.constant 0.000000e+00 : f32
    %234 = vector.broadcast %cst_79 : f32 to vector<8x8xf32>
    %235 = arith.maximumf %232, %234 : vector<8x8xf32>
    %236 = vector.broadcast %233 : f32 to vector<8x8xf32>
    %237 = arith.mulf %236, %235 : vector<8x8xf32>
    %238 = arith.addf %226, %237 : vector<8x8xf32>
    %239 = vector.extract_strided_slice %7 {offsets = [0, 19], sizes = [8, 1], strides = [1, 1]} : vector<8x32xf32> to vector<8x1xf32>
    %c0_80 = arith.constant 0 : index
    %c19 = arith.constant 19 : index
    %c0_81 = arith.constant 0 : index
    %240 = vector.load %arg4[%c0_80, %c19, %c0_81] : memref<1x32x8xf32, #tpu.memory_space<vmem>>, vector<1x1x8xf32>
    %241 = vector.shape_cast %240 : vector<1x1x8xf32> to vector<1x8xf32>
    %242 = vector.broadcast %239 : vector<8x1xf32> to vector<8x8xf32>
    %243 = vector.broadcast %241 : vector<1x8xf32> to vector<8x8xf32>
    %244 = arith.addf %242, %243 : vector<8x8xf32>
    %c19_82 = arith.constant 19 : index
    %245 = memref.load %arg5[%c19_82] : memref<32xf32, #tpu.memory_space<smem>>
    %cst_83 = arith.constant 0.000000e+00 : f32
    %246 = vector.broadcast %cst_83 : f32 to vector<8x8xf32>
    %247 = arith.maximumf %244, %246 : vector<8x8xf32>
    %248 = vector.broadcast %245 : f32 to vector<8x8xf32>
    %249 = arith.mulf %248, %247 : vector<8x8xf32>
    %250 = arith.addf %238, %249 : vector<8x8xf32>
    %251 = vector.extract_strided_slice %7 {offsets = [0, 20], sizes = [8, 1], strides = [1, 1]} : vector<8x32xf32> to vector<8x1xf32>
    %c0_84 = arith.constant 0 : index
    %c20 = arith.constant 20 : index
    %c0_85 = arith.constant 0 : index
    %252 = vector.load %arg4[%c0_84, %c20, %c0_85] : memref<1x32x8xf32, #tpu.memory_space<vmem>>, vector<1x1x8xf32>
    %253 = vector.shape_cast %252 : vector<1x1x8xf32> to vector<1x8xf32>
    %254 = vector.broadcast %251 : vector<8x1xf32> to vector<8x8xf32>
    %255 = vector.broadcast %253 : vector<1x8xf32> to vector<8x8xf32>
    %256 = arith.addf %254, %255 : vector<8x8xf32>
    %c20_86 = arith.constant 20 : index
    %257 = memref.load %arg5[%c20_86] : memref<32xf32, #tpu.memory_space<smem>>
    %cst_87 = arith.constant 0.000000e+00 : f32
    %258 = vector.broadcast %cst_87 : f32 to vector<8x8xf32>
    %259 = arith.maximumf %256, %258 : vector<8x8xf32>
    %260 = vector.broadcast %257 : f32 to vector<8x8xf32>
    %261 = arith.mulf %260, %259 : vector<8x8xf32>
    %262 = arith.addf %250, %261 : vector<8x8xf32>
    %263 = vector.extract_strided_slice %7 {offsets = [0, 21], sizes = [8, 1], strides = [1, 1]} : vector<8x32xf32> to vector<8x1xf32>
    %c0_88 = arith.constant 0 : index
    %c21 = arith.constant 21 : index
    %c0_89 = arith.constant 0 : index
    %264 = vector.load %arg4[%c0_88, %c21, %c0_89] : memref<1x32x8xf32, #tpu.memory_space<vmem>>, vector<1x1x8xf32>
    %265 = vector.shape_cast %264 : vector<1x1x8xf32> to vector<1x8xf32>
    %266 = vector.broadcast %263 : vector<8x1xf32> to vector<8x8xf32>
    %267 = vector.broadcast %265 : vector<1x8xf32> to vector<8x8xf32>
    %268 = arith.addf %266, %267 : vector<8x8xf32>
    %c21_90 = arith.constant 21 : index
    %269 = memref.load %arg5[%c21_90] : memref<32xf32, #tpu.memory_space<smem>>
    %cst_91 = arith.constant 0.000000e+00 : f32
    %270 = vector.broadcast %cst_91 : f32 to vector<8x8xf32>
    %271 = arith.maximumf %268, %270 : vector<8x8xf32>
    %272 = vector.broadcast %269 : f32 to vector<8x8xf32>
    %273 = arith.mulf %272, %271 : vector<8x8xf32>
    %274 = arith.addf %262, %273 : vector<8x8xf32>
    %275 = vector.extract_strided_slice %7 {offsets = [0, 22], sizes = [8, 1], strides = [1, 1]} : vector<8x32xf32> to vector<8x1xf32>
    %c0_92 = arith.constant 0 : index
    %c22 = arith.constant 22 : index
    %c0_93 = arith.constant 0 : index
    %276 = vector.load %arg4[%c0_92, %c22, %c0_93] : memref<1x32x8xf32, #tpu.memory_space<vmem>>, vector<1x1x8xf32>
    %277 = vector.shape_cast %276 : vector<1x1x8xf32> to vector<1x8xf32>
    %278 = vector.broadcast %275 : vector<8x1xf32> to vector<8x8xf32>
    %279 = vector.broadcast %277 : vector<1x8xf32> to vector<8x8xf32>
    %280 = arith.addf %278, %279 : vector<8x8xf32>
    %c22_94 = arith.constant 22 : index
    %281 = memref.load %arg5[%c22_94] : memref<32xf32, #tpu.memory_space<smem>>
    %cst_95 = arith.constant 0.000000e+00 : f32
    %282 = vector.broadcast %cst_95 : f32 to vector<8x8xf32>
    %283 = arith.maximumf %280, %282 : vector<8x8xf32>
    %284 = vector.broadcast %281 : f32 to vector<8x8xf32>
    %285 = arith.mulf %284, %283 : vector<8x8xf32>
    %286 = arith.addf %274, %285 : vector<8x8xf32>
    %287 = vector.extract_strided_slice %7 {offsets = [0, 23], sizes = [8, 1], strides = [1, 1]} : vector<8x32xf32> to vector<8x1xf32>
    %c0_96 = arith.constant 0 : index
    %c23 = arith.constant 23 : index
    %c0_97 = arith.constant 0 : index
    %288 = vector.load %arg4[%c0_96, %c23, %c0_97] : memref<1x32x8xf32, #tpu.memory_space<vmem>>, vector<1x1x8xf32>
    %289 = vector.shape_cast %288 : vector<1x1x8xf32> to vector<1x8xf32>
    %290 = vector.broadcast %287 : vector<8x1xf32> to vector<8x8xf32>
    %291 = vector.broadcast %289 : vector<1x8xf32> to vector<8x8xf32>
    %292 = arith.addf %290, %291 : vector<8x8xf32>
    %c23_98 = arith.constant 23 : index
    %293 = memref.load %arg5[%c23_98] : memref<32xf32, #tpu.memory_space<smem>>
    %cst_99 = arith.constant 0.000000e+00 : f32
    %294 = vector.broadcast %cst_99 : f32 to vector<8x8xf32>
    %295 = arith.maximumf %292, %294 : vector<8x8xf32>
    %296 = vector.broadcast %293 : f32 to vector<8x8xf32>
    %297 = arith.mulf %296, %295 : vector<8x8xf32>
    %298 = arith.addf %286, %297 : vector<8x8xf32>
    %299 = vector.extract_strided_slice %7 {offsets = [0, 24], sizes = [8, 1], strides = [1, 1]} : vector<8x32xf32> to vector<8x1xf32>
    %c0_100 = arith.constant 0 : index
    %c24 = arith.constant 24 : index
    %c0_101 = arith.constant 0 : index
    %300 = vector.load %arg4[%c0_100, %c24, %c0_101] : memref<1x32x8xf32, #tpu.memory_space<vmem>>, vector<1x1x8xf32>
    %301 = vector.shape_cast %300 : vector<1x1x8xf32> to vector<1x8xf32>
    %302 = vector.broadcast %299 : vector<8x1xf32> to vector<8x8xf32>
    %303 = vector.broadcast %301 : vector<1x8xf32> to vector<8x8xf32>
    %304 = arith.addf %302, %303 : vector<8x8xf32>
    %c24_102 = arith.constant 24 : index
    %305 = memref.load %arg5[%c24_102] : memref<32xf32, #tpu.memory_space<smem>>
    %cst_103 = arith.constant 0.000000e+00 : f32
    %306 = vector.broadcast %cst_103 : f32 to vector<8x8xf32>
    %307 = arith.maximumf %304, %306 : vector<8x8xf32>
    %308 = vector.broadcast %305 : f32 to vector<8x8xf32>
    %309 = arith.mulf %308, %307 : vector<8x8xf32>
    %310 = arith.addf %298, %309 : vector<8x8xf32>
    %311 = vector.extract_strided_slice %7 {offsets = [0, 25], sizes = [8, 1], strides = [1, 1]} : vector<8x32xf32> to vector<8x1xf32>
    %c0_104 = arith.constant 0 : index
    %c25 = arith.constant 25 : index
    %c0_105 = arith.constant 0 : index
    %312 = vector.load %arg4[%c0_104, %c25, %c0_105] : memref<1x32x8xf32, #tpu.memory_space<vmem>>, vector<1x1x8xf32>
    %313 = vector.shape_cast %312 : vector<1x1x8xf32> to vector<1x8xf32>
    %314 = vector.broadcast %311 : vector<8x1xf32> to vector<8x8xf32>
    %315 = vector.broadcast %313 : vector<1x8xf32> to vector<8x8xf32>
    %316 = arith.addf %314, %315 : vector<8x8xf32>
    %c25_106 = arith.constant 25 : index
    %317 = memref.load %arg5[%c25_106] : memref<32xf32, #tpu.memory_space<smem>>
    %cst_107 = arith.constant 0.000000e+00 : f32
    %318 = vector.broadcast %cst_107 : f32 to vector<8x8xf32>
    %319 = arith.maximumf %316, %318 : vector<8x8xf32>
    %320 = vector.broadcast %317 : f32 to vector<8x8xf32>
    %321 = arith.mulf %320, %319 : vector<8x8xf32>
    %322 = arith.addf %310, %321 : vector<8x8xf32>
    %323 = vector.extract_strided_slice %7 {offsets = [0, 26], sizes = [8, 1], strides = [1, 1]} : vector<8x32xf32> to vector<8x1xf32>
    %c0_108 = arith.constant 0 : index
    %c26 = arith.constant 26 : index
    %c0_109 = arith.constant 0 : index
    %324 = vector.load %arg4[%c0_108, %c26, %c0_109] : memref<1x32x8xf32, #tpu.memory_space<vmem>>, vector<1x1x8xf32>
    %325 = vector.shape_cast %324 : vector<1x1x8xf32> to vector<1x8xf32>
    %326 = vector.broadcast %323 : vector<8x1xf32> to vector<8x8xf32>
    %327 = vector.broadcast %325 : vector<1x8xf32> to vector<8x8xf32>
    %328 = arith.addf %326, %327 : vector<8x8xf32>
    %c26_110 = arith.constant 26 : index
    %329 = memref.load %arg5[%c26_110] : memref<32xf32, #tpu.memory_space<smem>>
    %cst_111 = arith.constant 0.000000e+00 : f32
    %330 = vector.broadcast %cst_111 : f32 to vector<8x8xf32>
    %331 = arith.maximumf %328, %330 : vector<8x8xf32>
    %332 = vector.broadcast %329 : f32 to vector<8x8xf32>
    %333 = arith.mulf %332, %331 : vector<8x8xf32>
    %334 = arith.addf %322, %333 : vector<8x8xf32>
    %335 = vector.extract_strided_slice %7 {offsets = [0, 27], sizes = [8, 1], strides = [1, 1]} : vector<8x32xf32> to vector<8x1xf32>
    %c0_112 = arith.constant 0 : index
    %c27 = arith.constant 27 : index
    %c0_113 = arith.constant 0 : index
    %336 = vector.load %arg4[%c0_112, %c27, %c0_113] : memref<1x32x8xf32, #tpu.memory_space<vmem>>, vector<1x1x8xf32>
    %337 = vector.shape_cast %336 : vector<1x1x8xf32> to vector<1x8xf32>
    %338 = vector.broadcast %335 : vector<8x1xf32> to vector<8x8xf32>
    %339 = vector.broadcast %337 : vector<1x8xf32> to vector<8x8xf32>
    %340 = arith.addf %338, %339 : vector<8x8xf32>
    %c27_114 = arith.constant 27 : index
    %341 = memref.load %arg5[%c27_114] : memref<32xf32, #tpu.memory_space<smem>>
    %cst_115 = arith.constant 0.000000e+00 : f32
    %342 = vector.broadcast %cst_115 : f32 to vector<8x8xf32>
    %343 = arith.maximumf %340, %342 : vector<8x8xf32>
    %344 = vector.broadcast %341 : f32 to vector<8x8xf32>
    %345 = arith.mulf %344, %343 : vector<8x8xf32>
    %346 = arith.addf %334, %345 : vector<8x8xf32>
    %347 = vector.extract_strided_slice %7 {offsets = [0, 28], sizes = [8, 1], strides = [1, 1]} : vector<8x32xf32> to vector<8x1xf32>
    %c0_116 = arith.constant 0 : index
    %c28 = arith.constant 28 : index
    %c0_117 = arith.constant 0 : index
    %348 = vector.load %arg4[%c0_116, %c28, %c0_117] : memref<1x32x8xf32, #tpu.memory_space<vmem>>, vector<1x1x8xf32>
    %349 = vector.shape_cast %348 : vector<1x1x8xf32> to vector<1x8xf32>
    %350 = vector.broadcast %347 : vector<8x1xf32> to vector<8x8xf32>
    %351 = vector.broadcast %349 : vector<1x8xf32> to vector<8x8xf32>
    %352 = arith.addf %350, %351 : vector<8x8xf32>
    %c28_118 = arith.constant 28 : index
    %353 = memref.load %arg5[%c28_118] : memref<32xf32, #tpu.memory_space<smem>>
    %cst_119 = arith.constant 0.000000e+00 : f32
    %354 = vector.broadcast %cst_119 : f32 to vector<8x8xf32>
    %355 = arith.maximumf %352, %354 : vector<8x8xf32>
    %356 = vector.broadcast %353 : f32 to vector<8x8xf32>
    %357 = arith.mulf %356, %355 : vector<8x8xf32>
    %358 = arith.addf %346, %357 : vector<8x8xf32>
    %359 = vector.extract_strided_slice %7 {offsets = [0, 29], sizes = [8, 1], strides = [1, 1]} : vector<8x32xf32> to vector<8x1xf32>
    %c0_120 = arith.constant 0 : index
    %c29 = arith.constant 29 : index
    %c0_121 = arith.constant 0 : index
    %360 = vector.load %arg4[%c0_120, %c29, %c0_121] : memref<1x32x8xf32, #tpu.memory_space<vmem>>, vector<1x1x8xf32>
    %361 = vector.shape_cast %360 : vector<1x1x8xf32> to vector<1x8xf32>
    %362 = vector.broadcast %359 : vector<8x1xf32> to vector<8x8xf32>
    %363 = vector.broadcast %361 : vector<1x8xf32> to vector<8x8xf32>
    %364 = arith.addf %362, %363 : vector<8x8xf32>
    %c29_122 = arith.constant 29 : index
    %365 = memref.load %arg5[%c29_122] : memref<32xf32, #tpu.memory_space<smem>>
    %cst_123 = arith.constant 0.000000e+00 : f32
    %366 = vector.broadcast %cst_123 : f32 to vector<8x8xf32>
    %367 = arith.maximumf %364, %366 : vector<8x8xf32>
    %368 = vector.broadcast %365 : f32 to vector<8x8xf32>
    %369 = arith.mulf %368, %367 : vector<8x8xf32>
    %370 = arith.addf %358, %369 : vector<8x8xf32>
    %371 = vector.extract_strided_slice %7 {offsets = [0, 30], sizes = [8, 1], strides = [1, 1]} : vector<8x32xf32> to vector<8x1xf32>
    %c0_124 = arith.constant 0 : index
    %c30 = arith.constant 30 : index
    %c0_125 = arith.constant 0 : index
    %372 = vector.load %arg4[%c0_124, %c30, %c0_125] : memref<1x32x8xf32, #tpu.memory_space<vmem>>, vector<1x1x8xf32>
    %373 = vector.shape_cast %372 : vector<1x1x8xf32> to vector<1x8xf32>
    %374 = vector.broadcast %371 : vector<8x1xf32> to vector<8x8xf32>
    %375 = vector.broadcast %373 : vector<1x8xf32> to vector<8x8xf32>
    %376 = arith.addf %374, %375 : vector<8x8xf32>
    %c30_126 = arith.constant 30 : index
    %377 = memref.load %arg5[%c30_126] : memref<32xf32, #tpu.memory_space<smem>>
    %cst_127 = arith.constant 0.000000e+00 : f32
    %378 = vector.broadcast %cst_127 : f32 to vector<8x8xf32>
    %379 = arith.maximumf %376, %378 : vector<8x8xf32>
    %380 = vector.broadcast %377 : f32 to vector<8x8xf32>
    %381 = arith.mulf %380, %379 : vector<8x8xf32>
    %382 = arith.addf %370, %381 : vector<8x8xf32>
    %383 = vector.extract_strided_slice %7 {offsets = [0, 31], sizes = [8, 1], strides = [1, 1]} : vector<8x32xf32> to vector<8x1xf32>
    %c0_128 = arith.constant 0 : index
    %c31 = arith.constant 31 : index
    %c0_129 = arith.constant 0 : index
    %384 = vector.load %arg4[%c0_128, %c31, %c0_129] : memref<1x32x8xf32, #tpu.memory_space<vmem>>, vector<1x1x8xf32>
    %385 = vector.shape_cast %384 : vector<1x1x8xf32> to vector<1x8xf32>
    %386 = vector.broadcast %383 : vector<8x1xf32> to vector<8x8xf32>
    %387 = vector.broadcast %385 : vector<1x8xf32> to vector<8x8xf32>
    %388 = arith.addf %386, %387 : vector<8x8xf32>
    %c31_130 = arith.constant 31 : index
    %389 = memref.load %arg5[%c31_130] : memref<32xf32, #tpu.memory_space<smem>>
    %cst_131 = arith.constant 0.000000e+00 : f32
    %390 = vector.broadcast %cst_131 : f32 to vector<8x8xf32>
    %391 = arith.maximumf %388, %390 : vector<8x8xf32>
    %392 = vector.broadcast %389 : f32 to vector<8x8xf32>
    %393 = arith.mulf %392, %391 : vector<8x8xf32>
    %394 = arith.addf %382, %393 : vector<8x8xf32>
    %395 = arith.negf %394 : vector<8x8xf32>
    %396 = math.exp %395 : vector<8x8xf32>
    %cst_132 = arith.constant 1.000000e+00 : f32
    %397 = vector.broadcast %cst_132 : f32 to vector<8x8xf32>
    %398 = arith.addf %397, %396 : vector<8x8xf32>
    %399 = arith.divf %397, %398 : vector<8x8xf32>
    %c0_133 = arith.constant 0 : index
    %400 = arith.index_cast %4 : i32 to index
    %c0_134 = arith.constant 0 : index
    %401 = vector.load %arg7[%c0_133, %400, %c0_134] : memref<1x8x8xf32, #tpu.memory_space<vmem>>, vector<1x8x8xf32>
    %402 = vector.shape_cast %401 : vector<1x8x8xf32> to vector<8x8xf32>
    %403 = vector.shape_cast %399 : vector<8x8xf32> to vector<1x8x8xf32>
    tpu.vector_store %arg7[%c0_133, %400, %c0_134], %403 {strides = array<i32>} : memref<1x8x8xf32, #tpu.memory_space<vmem>>, vector<1x8x8xf32>,
    %c1_i32_135 = arith.constant 1 : i32
    return
  }
  func.func @transform_0(%arg0: i32, %arg1: i32, %arg2: i32) -> (i32, i32, i32) {
    %c0_i32 = arith.constant 0 : i32
    %c0_i32_0 = arith.constant 0 : i32
    return %arg0, %arg1, %c0_i32 : i32, i32, i32
  }
  func.func @transform_1(%arg0: i32, %arg1: i32, %arg2: i32) -> (i32, i32, i32) {
    %c0_i32 = arith.constant 0 : i32
    %c0_i32_0 = arith.constant 0 : i32
    return %arg0, %c0_i32, %arg2 : i32, i32, i32
  }
  func.func @transform_2(%arg0: i32, %arg1: i32, %arg2: i32) -> i32 {
    %c0_i32 = arith.constant 0 : i32
    %c0_i32_0 = arith.constant 0 : i32
    return %c0_i32 : i32
  }
  func.func @transform_3(%arg0: i32, %arg1: i32, %arg2: i32) -> i32 {
    %c0_i32 = arith.constant 0 : i32
    %c0_i32_0 = arith.constant 0 : i32
    return %c0_i32 : i32
  }
  func.func @transform_4(%arg0: i32, %arg1: i32, %arg2: i32) -> (i32, i32, i32) {
    %c0_i32 = arith.constant 0 : i32
    return %arg0, %arg1, %arg2 : i32, i32, i32
  }
}

</mosaic_0001>

<bundles_post_ra>
// kernel: tpu_custom_call.1
= control target key start
LH: loop header
LB: loop body
LE: loop exit
PB: predicated region body
PF: predicated region fallthrough
CT: control target
= control target key end

     0   :  { %s1483_s0 = inlined_call_operand.vmem [shape: f32[2,8,32], index: 0, kind: input, shape index: {}]   ;;  %s1484_s1 = inlined_call_operand.vmem [shape: f32[2,32,8], index: 1, kind: input, shape index: {}]   ;;  %s1485_s2 = inlined_call_operand.vmem [shape: f32[32], index: 2, kind: input, shape index: {}]   ;;  %s1486_s3 = inlined_call_operand.<no memory space> [shape: f32[1], index: 3, kind: input, shape index: {}]   ;;  %s1487_s4 = inlined_call_operand.hbm [shape: f32[2,8,8], index: 4, kind: output, shape index: {}]  }
   0x1   :  { %9 = sst [smem:[#allocation2]] %s1486_s3 }
   0x2   :  { %10 = vsyncpa [#allocation5], 0 }
   0x3   :  { %11 = vsyncpa [#allocation4], 0 }
   0x4   :  { %13 = vsyncpa [#allocation4 + $0x1], 0  ;;  %s1263_s17 = smov 0   ;;  %s1265_s18 = smov 0  }
   0x5   :  { %s1267_s19 = smov 0   ;;  %s1269_s20 = smov 0  }
   0x6   :  { %s1271_s21 = smov 0   ;;  %s1273_s22 = smov 0  }
   0x7 LB: > { %s887_s3 = sadd.s32 4294967295, %s1199_s22   ;;  %s888_s23 = sadd.s32 4294967294, %s1199_s22   ;;  %s1199_s22 = sphi %s1273_s22, %s19_s22   ;;  %s1195_s21 = sphi %s1271_s21, %s1496_s21   ;;  %s1191_s20 = sphi %s1269_s20, %s1495_s20   ;;  %s1187_s19 = sphi %s1267_s19, %s1494_s19   ;;  %s1183_s18 = sphi %s1265_s18, %s1493_s18   ;;  %s1179_s17 = sphi %s1263_s17, %s1492_s17  }
   0x8   : > { %s38_s24 = sadd.s32 1, %s1195_s21  ;;  %s147_s25 = sadd.s32 1, %s1187_s19 }
   0x9   : > { %p40_p0 = scmp.ge.s32.totalorder %s38_s24, 2  ;;  %p157_p1 = scmp.ne.s32.totalorder %s1187_s19, %s1183_s18 }
   0xa   : > { %p158_p2 = scmp.eq.s32.totalorder %s887_s3, 1  ;;  %p163_p3 = scmp.ne.s32.totalorder %s1183_s18, %s1179_s17 }
   0xb   : > { %s1498_s24 = smov (%p40_p0, %s38_s24), 0  ;;  %p164_p5 = scmp.eq.s32.totalorder %s888_s23, 1 }
   0xc   : > { %p1303_p4 = por %p158_p2, %p157_p1  ;;  %s140_s27 = ssub.s32 %s1195_s21, %s1498_s24 }
   0xd   : > { %p889_p6 = scmp.ge.s32.totalorder %s1199_s22, 1  ;;  %p145_p7 = scmp.eq.s32.totalorder %s140_s27, 0 }
   0xe   : > { %p1310_p8 = por %p164_p5, %p163_p3  ;;  %p171_p9 = scmp.lt.s32.totalorder %s1199_s22, 3 }
   0xf   : > { %s1316_s29 = scalar_select %p145_p7, %s1187_s19, %s147_s25  }
  0x10   : > { %p1318_p10 = pnand %p889_p6, %p171_p9  ;;  %p1322_p11 = scmp.eq.s32.totalorder %s887_s3, 0 }
  0x11   : > { %s184_s8 = sshll.u32 %s1485_s2, 4  ;;  %s185_s8 = int_to_ptr.vmem [resolvable:$true] %s184_s8 }
  0x12   : > { %p973_p12 = pneg %p1318_p10  ;;  %s1102_s9 = scalar_lea.vmem %s185_s8, 16 }
  0x13   : > { %p1103_p0 = scmp.ne.s32.totalorder %s185_s8, %s1102_s9  ;;  %p1110_p5 = scmp.lt.s32.totalorder %s185_s8, %s185_s8 }
  0x14   : > { %p974_p13 = pnand %p1322_p11, %p973_p12  ;;  %p1111_p6 = scmp.lt.s32.totalorder %s1102_s9, %s1102_s9 }
  0x16   : > { %p1104_p1 = pneg %p974_p13  ;;  %p1112_p7 = por %p1111_p6, %p1110_p5 }
  0x18   : > { %p1105_p2 = pnand %p1104_p1, %p1103_p0 }
  0x1a   : > { %p1106_p3 = pneg %p1105_p2 }
  0x1c   : > { %p1113_p9 = pnand %p1112_p7, %p1106_p3 }
  0x1e   : > { %1116 = shalt.err (!%p1113_p9)
}
  0x1f   : > { %s1201_s10 = smov [#allocation3]   ;;  %221 = sbr.rel (%p1318_p10) target bundleno = 324 (0x144), region = 36 }
  0x20   : > { %976 = dma.vmem_to_smem (!%p974_p13), %s185_s8, 16, %s1201_s10, [#allocation5]  }
  0x26   : > { %1170 = dma.done.wait (%p1322_p11), [#allocation5], 16  }
  0x27   : > { %1172 = vsyncadd (%p1322_p11), [#allocation5], 4294967280 }
  0x28   : > { %227 = sfence }
  0x29   : > { %p258_p12 = scmp.lt.s32.totalorder %s1191_s20, 1  ;;  %v1202_v0 = vmov 2   ;;  %v1203_v1 = vmov 0   ;;  %v1204_v3 = vmov 3   ;;  %v1205_v4 = vmov 1   ;;  %s288_s3 = sld [smem:[#allocation3]] }
  0x2a   : > { %1067 = vset.pattern.permute.xlu1 %v1202_v0  ;;  %1065 = vset.pattern.permute.xlu0 %v1203_v1  ;;  %v1206_v5 = vmov 4   ;;  %v1207_v6 = vmov 5   ;;  %v1208_v7 = vmov 6   ;;  %v1209_v8 = vmov 8   ;;  %s273_s30 = sld [smem:[#allocation2]]  ;;  %s900_s5 = sld [smem:[#allocation3 + $0x1]] }
  0x2b   : > { %s1341_s11 = scalar_select %p258_p12, %s1191_s20, 1  ;;  %v1210_v9 = vmov 7   ;;  %v1211_v10 = vmov 11   ;;  %v1212_v11 = vmov 9   ;;  %v1213_v12 = vmov 14  }
  0x2c   : > { %v1214_v13 = vmov 10   ;;  %v1215_v14 = vmov 17   ;;  %v1216_v15 = vmov 12   ;;  %v1217_v16 = vmov 20   ;;  %s1389_s6 = sld [smem:[#allocation3 + $0x2]]  ;;  %s1391_s7 = sld [smem:[#allocation3 + $0x3]] }
  0x2d   : > { %s895_s12 = sshll.u32 %s1341_s11, 3  ;;  %v1218_v17 = vmov 13   ;;  %v1219_v18 = vmov 23   ;;  %v1220_v19 = vmov 15   ;;  %v1221_v20 = vmov 26   ;;  %s966_s16 = sshll.u32 %s1341_s11, 5 }
  0x2e   : > { %s264_s15 = scalar_lea.vmem %s1483_s0, %s895_s12  ;;  %v1222_v21 = vmov 16   ;;  %v1223_v22 = vmov 29   ;;  %v1224_v23 = vmov 18   ;;  %v1225_v24 = vmov 31   ;;  %s1385_s27 = scalar_lea.vmem %s1484_s1, %s966_s16 }
  0x2f   : > { %v1347_v2 = vld [vmem:[%s264_s15] sm:$0xff]  ;;  %v1226_v25 = vmov 19   ;;  %v1227_v26 = vmov 21   ;;  %v1228_v27 = vmov 22   ;;  %v1229_v28 = vmov 24   ;;  %s1395_s8 = sld [smem:[#allocation3 + $0x4]] }
  0x30   : > { %310 = vperm.xlu1 %1067, %v1347_v2   ;;  %280 = vperm.xlu0 %1065, %v1347_v2   ;;  %v1230_v29 = vmov 25   ;;  %v1231_v30 = vmov 27   ;;  %v1232_v31 = vmov 28   ;;  %v1233_v32 = vmov 30   ;;  %v898_v33 = vld [vmem:[%s1385_s27] ss:$0 sm:$0xff] }
  0x31   : > { %v901_v36 = vld [vmem:[%s1385_s27 + $0x2] ss:$0 sm:$0xff]  ;;  %v290_v38 = vstv %s288_s3  ;;  %v903_v40 = vld [vmem:[%s1385_s27 + $0x3] ss:$0 sm:$0xff]  ;;  %v899_v41 = vld [vmem:[%s1385_s27 + $0x1] ss:$0 sm:$0xff] }
  0x32   : > { %v275_v43 = vstv %s273_s30  ;;  %s1397_s9 = sld [smem:[#allocation3 + $0x5]]  ;;  %v305_v49 = vstv %s900_s5  ;;  %v905_v53 = vld [vmem:[%s1385_s27 + $0x4] ss:$0 sm:$0xff]  ;;  %v907_v54 = vld [vmem:[%s1385_s27 + $0x5] ss:$0 sm:$0xff]  ;;  %s910_s10 = sld [smem:[#allocation3 + $0x6]] }
  0x33   : > { %v320_v55 = vstv %s1389_s6  ;;  %v335_v60 = vstv %s1391_s7  ;;  %s912_s11 = sld [smem:[#allocation3 + $0x7]]  ;;  %s914_s12 = sld [smem:[#allocation3 + $0x8]]  ;;  %vm764_vm0 = vcmask 64512  }
  0x34   : > { %1068 = vset.pattern.permute.xlu1 %v1204_v3  ;;  %1066 = vset.pattern.permute.xlu0 %v1205_v4  ;;  %v909_v4 = vld [vmem:[%s1385_s27 + $0x6] ss:$0 sm:$0xff]  ;;  %s916_s13 = sld [smem:[#allocation3 + $0x9]]  ;;  %s918_s14 = sld [smem:[#allocation3 + $0xa]] }
  0x35   : > { %325 = vperm.xlu1 %1068, %v1347_v2   ;;  %295 = vperm.xlu0 %1066, %v1347_v2   ;;  %v350_v1 = vstv %s1395_s8  ;;  %s920_s15 = sld [smem:[#allocation3 + $0xb]]  ;;  %s922_s16 = sld [smem:[#allocation3 + $0xc]] }
  0x36   : > { %s924_s3 = sld [smem:[#allocation3 + $0xd]]  ;;  %s926_s23 = sld [smem:[#allocation3 + $0xe]] }
  0x37   : > { %s928_s25 = sld [smem:[#allocation3 + $0xf]]  ;;  %s930_s30 = sld [smem:[#allocation3 + $0x10]] }
  0x38   : > { %s932_s5 = sld [smem:[#allocation3 + $0x11]]  ;;  %s934_s6 = sld [smem:[#allocation3 + $0x12]] }
  0x39   : > { %1069 = vset.pattern.permute.xlu1 %v1206_v5  ;;  %1070 = vset.pattern.permute.xlu0 %v1207_v6  ;;  %s936_s7 = sld [smem:[#allocation3 + $0x13]]  ;;  %s938_s8 = sld [smem:[#allocation3 + $0x14]] }
  0x3a   : > { %340 = vperm.xlu1 %1069, %v1347_v2   ;;  %355 = vperm.xlu0 %1070, %v1347_v2  }
  0x3e   : > { %1071 = vset.pattern.permute.xlu1 %v1208_v7  ;;  %1073 = vset.pattern.permute.xlu0 %v1209_v8  ;;  %v365_v7 = vstv %s1397_s9  ;;  %s940_s9 = sld [smem:[#allocation3 + $0x15]] }
  0x3f   : > { %370 = vperm.xlu1 %1071, %v1347_v2   ;;  %400 = vperm.xlu0 %1073, %v1347_v2  }
  0x43   : > { %1072 = vset.pattern.permute.xlu1 %v1210_v9  ;;  %1076 = vset.pattern.permute.xlu0 %v1211_v10 }
  0x44   : > { %385 = vperm.xlu1 %1072, %v1347_v2   ;;  %445 = vperm.xlu0 %1076, %v1347_v2  }
  0x48   : > { %1074 = vset.pattern.permute.xlu1 %v1212_v11  ;;  %1079 = vset.pattern.permute.xlu0 %v1213_v12  ;;  %v913_v12 = vld [vmem:[%s1385_s27 + $0x8] ss:$0 sm:$0xff] }
  0x49   : > { %415 = vperm.xlu1 %1074, %v1347_v2   ;;  %490 = vperm.xlu0 %1079, %v1347_v2  }
  0x4d   : > { %1075 = vset.pattern.permute.xlu1 %v1214_v13  ;;  %1082 = vset.pattern.permute.xlu0 %v1215_v14 }
  0x4e   : > { %430 = vperm.xlu1 %1075, %v1347_v2   ;;  %535 = vperm.xlu0 %1082, %v1347_v2  }
  0x52   : > { %1077 = vset.pattern.permute.xlu1 %v1216_v15  ;;  %1085 = vset.pattern.permute.xlu0 %v1217_v16  ;;  %v380_v16 = vstv %s910_s10  ;;  %s942_s10 = sld [smem:[#allocation3 + $0x16]] }
  0x53   : > { %460 = vperm.xlu1 %1077, %v1347_v2   ;;  %580 = vperm.xlu0 %1085, %v1347_v2  }
  0x57   : > { %1078 = vset.pattern.permute.xlu1 %v1218_v17  ;;  %1088 = vset.pattern.permute.xlu0 %v1219_v18  ;;  %v911_v18 = vld [vmem:[%s1385_s27 + $0x7] ss:$0 sm:$0xff] }
  0x58   : > { %475 = vperm.xlu1 %1078, %v1347_v2   ;;  %625 = vperm.xlu0 %1088, %v1347_v2  }
  0x5c   : > { %1080 = vset.pattern.permute.xlu1 %v1220_v19  ;;  %1091 = vset.pattern.permute.xlu0 %v1221_v20 }
  0x5d   : > { %505 = vperm.xlu1 %1080, %v1347_v2   ;;  %670 = vperm.xlu0 %1091, %v1347_v2  }
  0x61   : > { %1081 = vset.pattern.permute.xlu1 %v1222_v21  ;;  %1094 = vset.pattern.permute.xlu0 %v1223_v22 }
  0x62   : > { %520 = vperm.xlu1 %1081, %v1347_v2   ;;  %715 = vperm.xlu0 %1094, %v1347_v2  }
  0x66   : > { %1083 = vset.pattern.permute.xlu1 %v1224_v23  ;;  %1097 = vset.pattern.permute.xlu0 %v1225_v24 }
  0x67   : > { %550 = vperm.xlu1 %1083, %v1347_v2  }
  0x6b   : > { %1084 = vset.pattern.permute.xlu1 %v1226_v25 }
  0x6c   : > { %565 = vperm.xlu1 %1084, %v1347_v2  }
  0x70   : > { %1086 = vset.pattern.permute.xlu1 %v1227_v26 }
  0x71   : > { %595 = vperm.xlu1 %1086, %v1347_v2  }
  0x75   : > { %1087 = vset.pattern.permute.xlu1 %v1228_v27  ;;  %v915_v27 = vld [vmem:[%s1385_s27 + $0x9] ss:$0 sm:$0xff] }
  0x76   : > { %610 = vperm.xlu1 %1087, %v1347_v2  }
  0x7a   : > { %1089 = vset.pattern.permute.xlu1 %v1229_v28  ;;  %v410_v28 = vstv %s914_s12  ;;  %s946_s12 = sld [smem:[#allocation3 + $0x18]] }
  0x7b   : > { %640 = vperm.xlu1 %1089, %v1347_v2  }
  0x7f   : > { %1090 = vset.pattern.permute.xlu1 %v1230_v29 }
  0x80   : > { %655 = vperm.xlu1 %1090, %v1347_v2  }
  0x84   : > { %1092 = vset.pattern.permute.xlu1 %v1231_v30 }
  0x85   : > { %685 = vperm.xlu1 %1092, %v1347_v2  }
  0x89   : > { %1093 = vset.pattern.permute.xlu1 %v1232_v31 }
  0x8a   : > { %700 = vperm.xlu1 %1093, %v1347_v2  }
  0x8e   : > { %1095 = vset.pattern.permute.xlu1 %v1233_v32 }
  0x8f   : > { %730 = vperm.xlu1 %1095, %v1347_v2  }
  0x93   : > { %1096 = vset.pattern.permute.xlu1 %v1225_v24  ;;  %v395_v24 = vstv %s912_s11  ;;  %s944_s11 = sld [smem:[#allocation3 + $0x17]] }
  0x94   : > { %745 = vperm.xlu1 %1096, %v1347_v2  }
  0xaf   : > { %v311_v34 = vpop.permute.xlu1 %310  ;;  %v281_v35 = vpop.permute.xlu0 %280 }
  0xb0   : > { %v287_v37 = vadd.f32 %v898_v33, %v281_v35  ;;  %v317_v42 = vadd.f32 %v901_v36, %v311_v34  ;;  %v919_v33 = vld [vmem:[%s1385_s27 + $0xb] ss:$0 sm:$0xff] }
  0xb2   : > { %v289_v39 = vmax.f32 %v287_v37, 0.0  ;;  %v319_v50 = vmax.f32 %v317_v42, 0.0  ;;  %v425_v37 = vstv %s916_s13  ;;  %s948_s13 = sld [smem:[#allocation3 + $0x19]] }
  0xb4   : > { %v291_v44 = vmul.f32 %v290_v38, %v289_v39  ;;  %v326_v45 = vpop.permute.xlu1 %325  ;;  %v296_v46 = vpop.permute.xlu0 %295  ;;  %v321_v63 = vmul.f32 %v320_v55, %v319_v50  ;;  %v917_v39 = vld [vmem:[%s1385_s27 + $0xa] ss:$0 sm:$0xff] }
  0xb5   : > { %v332_v47 = vadd.f32 %v903_v40, %v326_v45  ;;  %v302_v48 = vadd.f32 %v899_v41, %v296_v46  ;;  %v440_v45 = vstv %s918_s14  ;;  %s950_s14 = sld [smem:[#allocation3 + $0x1a]] }
  0xb6   : > { %v292_v51 = vadd.f32 %v291_v44, %v275_v43 }
  0xb7   : > { %v304_v52 = vmax.f32 %v302_v48, 0.0  ;;  %v334_v56 = vmax.f32 %v332_v47, 0.0  ;;  %v921_v48 = vld [vmem:[%s1385_s27 + $0xc] ss:$0 sm:$0xff] }
  0xb9   : > { %v306_v57 = vmul.f32 %v305_v49, %v304_v52  ;;  %v341_v58 = vpop.permute.xlu1 %340  ;;  %v356_v59 = vpop.permute.xlu0 %355  ;;  %v336_v5 = vmul.f32 %v335_v60, %v334_v56  ;;  %v455_v49 = vstv %s920_s15  ;;  %v923_v60 = vld [vmem:[%s1385_s27 + $0xd] ss:$0 sm:$0xff]  ;;  %s952_s15 = sld [smem:[#allocation3 + $0x1b]] }
  0xba   : > { %v347_v61 = vadd.f32 %v905_v53, %v341_v58  ;;  %v362_v62 = vadd.f32 %v907_v54, %v356_v59  ;;  %v925_v54 = vld [vmem:[%s1385_s27 + $0xe] ss:$0 sm:$0xff]  ;;  %v470_v58 = vstv %s922_s16  ;;  %s954_s16 = sld [smem:[#allocation3 + $0x1c]] }
  0xbb   : > { %v307_v0 = vadd.f32 %v306_v57, %v292_v51 }
  0xbc   : > { %v349_v2 = vmax.f32 %v347_v61, 0.0  ;;  %v364_v3 = vmax.f32 %v362_v62, 0.0 }
  0xbd   : > { %v322_v6 = vadd.f32 %v321_v63, %v307_v0 }
  0xbe   : > { %v351_v8 = vmul.f32 %v350_v1, %v349_v2  ;;  %v371_v9 = vpop.permute.xlu1 %370  ;;  %v401_v13 = vpop.permute.xlu0 %400  ;;  %v366_v14 = vmul.f32 %v365_v7, %v364_v3  ;;  %v485_v2 = vstv %s924_s3  ;;  %s956_s3 = sld [smem:[#allocation3 + $0x1d]] }
  0xbf   : > { %v337_v10 = vadd.f32 %v336_v5, %v322_v6  ;;  %v377_v11 = vadd.f32 %v909_v4, %v371_v9  ;;  %v407_v19 = vadd.f32 %v913_v12, %v401_v13  ;;  %v927_v5 = vld [vmem:[%s1385_s27 + $0xf] ss:$0 sm:$0xff]  ;;  %v500_v6 = vstv %s926_s23  ;;  %s958_s23 = sld [smem:[#allocation3 + $0x1e]] }
  0xc1   : > { %v352_v15 = vadd.f32 %v351_v8, %v337_v10  ;;  %v379_v17 = vmax.f32 %v377_v11, 0.0  ;;  %v409_v26 = vmax.f32 %v407_v19, 0.0  ;;  %v931_v11 = vld [vmem:[%s1385_s27 + $0x11] ss:$0 sm:$0xff] }
  0xc3   : > { %v386_v20 = vpop.permute.xlu1 %385  ;;  %v367_v21 = vadd.f32 %v366_v14, %v352_v15  ;;  %v381_v22 = vmul.f32 %v380_v16, %v379_v17  ;;  %v446_v34 = vpop.permute.xlu0 %445  ;;  %v411_v36 = vmul.f32 %v410_v28, %v409_v26  ;;  %v515_v15 = vstv %s928_s25  ;;  %v929_v17 = vld [vmem:[%s1385_s27 + $0x10] ss:$0 sm:$0xff]  ;;  %v933_v26 = vld [vmem:[%s1385_s27 + $0x12] ss:$0 sm:$0xff]  ;;  %s960_s25 = sld [smem:[#allocation3 + $0x1f]] }
  0xc4   : > { %v392_v23 = vadd.f32 %v911_v18, %v386_v20  ;;  %v452_v40 = vadd.f32 %v919_v33, %v446_v34 }
  0xc5   : > { %v382_v29 = vadd.f32 %v381_v22, %v367_v21 }
  0xc6   : > { %v394_v25 = vmax.f32 %v392_v23, 0.0  ;;  %v454_v47 = vmax.f32 %v452_v40, 0.0  ;;  %v530_v23 = vstv %s930_s30  ;;  %s255_s30 = sand.u32 1, %s1183_s18  }
  0xc8   : > { %v396_v30 = vmul.f32 %v395_v24, %v394_v25  ;;  %v416_v31 = vpop.permute.xlu1 %415  ;;  %v491_v55 = vpop.permute.xlu0 %490  ;;  %v456_v57 = vmul.f32 %v455_v49, %v454_v47  ;;  %v939_v47 = vld [vmem:[%s1385_s27 + $0x15] ss:$0 sm:$0xff] }
  0xc9   : > { %v422_v32 = vadd.f32 %v915_v27, %v416_v31  ;;  %v497_v61 = vadd.f32 %v925_v54, %v491_v55  ;;  %v545_v27 = vstv %s932_s5  ;;  %s894_s5 = sshll.u32 %s255_s30, 3 }
  0xca   : > { %v397_v35 = vadd.f32 %v396_v30, %v382_v29 }
  0xcb   : > { %v424_v38 = vmax.f32 %v422_v32, 0.0  ;;  %v499_v4 = vmax.f32 %v497_v61, 0.0  ;;  %v937_v32 = vld [vmem:[%s1385_s27 + $0x14] ss:$0 sm:$0xff] }
  0xcc   : > { %v412_v42 = vadd.f32 %v411_v36, %v397_v35  ;;  %v560_v36 = vstv %s934_s6  ;;  %s963_s6 = sshll.u32 %s1191_s20, 7  ;;  %s1234_s20 = smov [#allocation6]  }
  0xcd   : > { %v431_v41 = vpop.permute.xlu1 %430  ;;  %v426_v43 = vmul.f32 %v425_v37, %v424_v38  ;;  %v536_v12 = vpop.permute.xlu0 %535  ;;  %v501_v14 = vmul.f32 %v500_v6, %v499_v4  ;;  %v935_v38 = vld [vmem:[%s1385_s27 + $0x13] ss:$0 sm:$0xff]  ;;  %v945_v4 = vld [vmem:[%s1385_s27 + $0x18] ss:$0 sm:$0xff] }
  0xce   : > { %v437_v44 = vadd.f32 %v917_v39, %v431_v41  ;;  %v542_v18 = vadd.f32 %v931_v11, %v536_v12 }
  0xcf   : > { %v427_v50 = vadd.f32 %v426_v43, %v412_v42 }
  0xd0   : > { %v439_v46 = vmax.f32 %v437_v44, 0.0  ;;  %v544_v25 = vmax.f32 %v542_v18, 0.0  ;;  %v575_v44 = vstv %s936_s7 }
  0xd2   : > { %v441_v51 = vmul.f32 %v440_v45, %v439_v46  ;;  %v461_v52 = vpop.permute.xlu1 %460  ;;  %v581_v33 = vpop.permute.xlu0 %580  ;;  %v546_v35 = vmul.f32 %v545_v27, %v544_v25  ;;  %v951_v25 = vld [vmem:[%s1385_s27 + $0x1b] ss:$0 sm:$0xff] }
  0xd3   : > { %v467_v53 = vadd.f32 %v921_v48, %v461_v52  ;;  %v587_v39 = vadd.f32 %v937_v32, %v581_v33  ;;  %v590_v48 = vstv %s938_s8 }
  0xd4   : > { %v442_v56 = vadd.f32 %v441_v51, %v427_v50 }
  0xd5   : > { %v469_v59 = vmax.f32 %v467_v53, 0.0  ;;  %v589_v46 = vmax.f32 %v587_v39, 0.0  ;;  %v943_v53 = vld [vmem:[%s1385_s27 + $0x17] ss:$0 sm:$0xff] }
  0xd6   : > { %v457_v63 = vadd.f32 %v456_v57, %v442_v56  ;;  %v605_v57 = vstv %s940_s9 }
  0xd7   : > { %v476_v62 = vpop.permute.xlu1 %475  ;;  %v471_v0 = vmul.f32 %v470_v58, %v469_v59  ;;  %v626_v54 = vpop.permute.xlu0 %625  ;;  %v591_v56 = vmul.f32 %v590_v48, %v589_v46  ;;  %v941_v59 = vld [vmem:[%s1385_s27 + $0x16] ss:$0 sm:$0xff]  ;;  %v957_v46 = vld [vmem:[%s1385_s27 + $0x1e] ss:$0 sm:$0xff] }
  0xd8   : > { %v482_v1 = vadd.f32 %v923_v60, %v476_v62  ;;  %v632_v60 = vadd.f32 %v943_v53, %v626_v54  ;;  %v740_v54 = vstv %s958_s23 }
  0xd9   : > { %v472_v7 = vadd.f32 %v471_v0, %v457_v63 }
  0xda   : > { %v484_v3 = vmax.f32 %v482_v1, 0.0  ;;  %v620_v1 = vstv %s942_s10  ;;  %s1436_s10 = scalar_lea.hbm %s1487_s4, %s963_s6 }
  0xdc   : > { %v486_v8 = vmul.f32 %v485_v2, %v484_v3  ;;  %v506_v9 = vpop.permute.xlu1 %505  ;;  %v634_v3 = vmax.f32 %v632_v60, 0.0  ;;  %v671_v11 = vpop.permute.xlu0 %670 }
  0xdd   : > { %v512_v10 = vadd.f32 %v927_v5, %v506_v9  ;;  %v635_v5 = vstv %s944_s11  ;;  %s767_s11 = scalar_lea.sflag [#allocation4], %s255_s30 }
  0xde   : > { %v487_v13 = vadd.f32 %v486_v8, %v472_v7 }
  0xdf   : > { %v514_v16 = vmax.f32 %v512_v10, 0.0  ;;  %v949_v10 = vld [vmem:[%s1385_s27 + $0x1a] ss:$0 sm:$0xff] }
  0xe0   : > { %v502_v20 = vadd.f32 %v501_v14, %v487_v13  ;;  %v636_v13 = vmul.f32 %v635_v5, %v634_v3  ;;  %v650_v14 = vstv %s946_s12 }
  0xe1   : > { %v521_v19 = vpop.permute.xlu1 %520  ;;  %v516_v21 = vmul.f32 %v515_v15, %v514_v16  ;;  %v947_v16 = vld [vmem:[%s1385_s27 + $0x19] ss:$0 sm:$0xff]  ;;  %v716_v32 = vpop.permute.xlu0 %715 }
  0xe2   : > { %v527_v22 = vadd.f32 %v929_v17, %v521_v19  ;;  %v677_v17 = vadd.f32 %v949_v10, %v671_v11 }
  0xe3   : > { %v517_v28 = vadd.f32 %v516_v21, %v502_v20 }
  0xe4   : > { %v529_v24 = vmax.f32 %v527_v22, 0.0  ;;  %v665_v22 = vstv %s948_s13  ;;  %s1121_s13 = sshll.u32 %s1234_s20, 4  ;;  %s1122_s13 = int_to_ptr.vmem [resolvable:$false] %s1121_s13 }
  0xe6   : > { %v531_v29 = vmul.f32 %v530_v23, %v529_v24  ;;  %v551_v30 = vpop.permute.xlu1 %550  ;;  %v679_v24 = vmax.f32 %v677_v17, 0.0 }
  0xe7   : > { %v557_v31 = vadd.f32 %v933_v26, %v551_v30  ;;  %v680_v26 = vstv %s950_s14  ;;  %s1123_s14 = scalar_lea.vmem %s1122_s13, 256 }
  0xe8   : > { %v532_v34 = vadd.f32 %v531_v29, %v517_v28 }
  0xe9   : > { %v559_v37 = vmax.f32 %v557_v31, 0.0  ;;  %v955_v31 = vld [vmem:[%s1385_s27 + $0x1d] ss:$0 sm:$0xff] }
  0xea   : > { %v547_v41 = vadd.f32 %v546_v35, %v532_v34  ;;  %v681_v34 = vmul.f32 %v680_v26, %v679_v24  ;;  %v695_v35 = vstv %s952_s15 }
  0xeb   : > { %v566_v40 = vpop.permute.xlu1 %565  ;;  %v561_v42 = vmul.f32 %v560_v36, %v559_v37  ;;  %v953_v37 = vld [vmem:[%s1385_s27 + $0x1c] ss:$0 sm:$0xff] }
  0xec   : > { %v572_v43 = vadd.f32 %v935_v38, %v566_v40  ;;  %v722_v38 = vadd.f32 %v955_v31, %v716_v32 }
  0xed   : > { %v562_v49 = vadd.f32 %v561_v42, %v547_v41 }
  0xee   : > { %v574_v45 = vmax.f32 %v572_v43, 0.0  ;;  %v710_v43 = vstv %s954_s16 }
  0xf0   : > { %v576_v50 = vmul.f32 %v575_v44, %v574_v45  ;;  %v596_v51 = vpop.permute.xlu1 %595  ;;  %v724_v45 = vmax.f32 %v722_v38, 0.0 }
  0xf1   : > { %v602_v52 = vadd.f32 %v939_v47, %v596_v51  ;;  %v725_v47 = vstv %s956_s3 }
  0xf2   : > { %v577_v55 = vadd.f32 %v576_v50, %v562_v49  ;;  %v726_v53 = vmul.f32 %v725_v47, %v724_v45 }
  0xf3   : > { %v604_v58 = vmax.f32 %v602_v52, 0.0 }
  0xf4   : > { %v592_v62 = vadd.f32 %v591_v56, %v577_v55  ;;  %v959_v56 = vld [vmem:[%s1385_s27 + $0x1f] ss:$0 sm:$0xff]  ;;  %s257_s27 = scalar_lea.vmem [#allocation6], %s894_s5 }
  0xf5   : > { %v611_v61 = vpop.permute.xlu1 %610  ;;  %v606_v63 = vmul.f32 %v605_v57, %v604_v58  ;;  %s782_s7 = sshll.u32 %s257_s27, 4  ;;  %s1438_s7 = int_to_ptr.vmem [resolvable:$true] %s782_s7 }
  0xf6   : > { %v617_v0 = vadd.f32 %v941_v59, %v611_v61  ;;  %v755_v61 = vstv %s960_s25  ;;  %s1117_s12 = scalar_lea.vmem %s1438_s7, 128  ;;  %p1124_p0 = scmp.lt.s32.totalorder %s1438_s7, %s1122_s13 }
  0xf7   : > { %v607_v6 = vadd.f32 %v606_v63, %v592_v62  ;;  %p1118_p10 = scmp.ne.s32.totalorder %s1438_s7, %s1117_s12  ;;  %p1125_p1 = scmp.lt.s32.totalorder %s1123_s14, %s1117_s12 }
  0xf8   : > { %v619_v2 = vmax.f32 %v617_v0, 0.0 }
  0xf9   : > { %p1119_p11 = pnand %p1118_p10, %p1303_p4  ;;  %p1126_p2 = por %p1125_p1, %p1124_p0 }
  0xfa   : > { %v621_v7 = vmul.f32 %v620_v1, %v619_v2  ;;  %v641_v8 = vpop.permute.xlu1 %640 }
  0xfb   : > { %v647_v9 = vadd.f32 %v945_v4, %v641_v8  ;;  %p1120_p13 = pneg %p1119_p11 }
  0xfc   : > { %v622_v12 = vadd.f32 %v621_v7, %v607_v6 }
  0xfd   : > { %v649_v15 = vmax.f32 %v647_v9, 0.0  ;;  %p1127_p3 = pnand %p1126_p2, %p1120_p13 }
  0xfe   : > { %v637_v19 = vadd.f32 %v636_v13, %v622_v12 }
  0xff   : > { %v656_v18 = vpop.permute.xlu1 %655  ;;  %v651_v20 = vmul.f32 %v650_v14, %v649_v15 }
 0x100   : > { %v662_v21 = vadd.f32 %v947_v16, %v656_v18 }
 0x101   : > { %v652_v27 = vadd.f32 %v651_v20, %v637_v19 }
 0x102   : > { %v664_v23 = vmax.f32 %v662_v21, 0.0 }
 0x104   : > { %v666_v28 = vmul.f32 %v665_v22, %v664_v23  ;;  %v686_v29 = vpop.permute.xlu1 %685 }
 0x105   : > { %v692_v30 = vadd.f32 %v951_v25, %v686_v29 }
 0x106   : > { %v667_v33 = vadd.f32 %v666_v28, %v652_v27 }
 0x107   : > { %v694_v36 = vmax.f32 %v692_v30, 0.0 }
 0x108   : > { %v682_v40 = vadd.f32 %v681_v34, %v667_v33 }
 0x109   : > { %v701_v39 = vpop.permute.xlu1 %700  ;;  %v696_v41 = vmul.f32 %v695_v35, %v694_v36 }
 0x10a   : > { %v707_v42 = vadd.f32 %v953_v37, %v701_v39 }
 0x10b   : > { %v697_v48 = vadd.f32 %v696_v41, %v682_v40 }
 0x10c   : > { %v709_v44 = vmax.f32 %v707_v42, 0.0 }
 0x10e   : > { %v711_v49 = vmul.f32 %v710_v43, %v709_v44  ;;  %v731_v50 = vpop.permute.xlu1 %730 }
 0x10f   : > { %v737_v51 = vadd.f32 %v957_v46, %v731_v50 }
 0x110   : > { %v712_v52 = vadd.f32 %v711_v49, %v697_v48 }
 0x111   : > { %v739_v55 = vmax.f32 %v737_v51, 0.0 }
 0x112   : > { %v727_v58 = vadd.f32 %v726_v53, %v712_v52 }
 0x113   : > { %v746_v57 = vpop.permute.xlu1 %745  ;;  %v741_v59 = vmul.f32 %v740_v54, %v739_v55 }
 0x114   : > { %v752_v60 = vadd.f32 %v959_v56, %v746_v57 }
 0x115   : > { %v742_v63 = vadd.f32 %v741_v59, %v727_v58 }
 0x116   : > { %v754_v62 = vmax.f32 %v752_v60, 0.0 }
 0x118   : > { %v756_v0 = vmul.f32 %v755_v61, %v754_v62 }
 0x11a   : > { %v757_v1 = vadd.f32 %v756_v0, %v742_v63 }
 0x11c   : > { %v961_v2 = vmul.f32 -1.442695, %v757_v1 }
 0x11e   : > { %1098 = vpow2.f32 %v961_v2 }
 0x128   : > { %v1099_v3 = vpop.eup %1098 }
 0x129   : > { %v761_v4 = vadd.f32 1.0, %v1099_v3 }
 0x12b   : > { %1100 = vrcp.f32 %v761_v4 }
 0x135   : > { %v1101_v5 = vpop.eup %1100 }
 0x136   : > { %765 = vst.msk [vmem:[%s257_s27] sm:$0xff] %vm764_vm0, %v1101_v5 }
 0x137   : > { %1130 = shalt.err (!%p1127_p3)
}
 0x138   : > { %s1131_s15 = scalar_lea.hbm %s1436_s10, 128  ;;  %s1135_s23 = scalar_lea.hbm %s1487_s4, 256 }
 0x139   : > { %p1132_p5 = scmp.ne.s32.totalorder %s1436_s10, %s1131_s15  ;;  %p1136_p9 = scmp.lt.u32.totalorder %s1436_s10, %s1487_s4 }
 0x13a   : > { %p1137_p12 = scmp.lt.u32.totalorder %s1135_s23, %s1131_s15  ;;  %p1139_p11 = scmp.lt.u32.totalorder %s1131_s15, %s1436_s10 }
 0x13b   : > { %p1133_p6 = pnand %p1132_p5, %p1303_p4 }
 0x13c   : > { %p1138_p10 = por %p1137_p12, %p1136_p9 }
 0x13d   : > { %p1134_p7 = pneg %p1133_p6 }
 0x13e   : > { %p1140_p13 = por %p1139_p11, %p1138_p10 }
 0x140   : > { %p1141_p0 = pnand %p1140_p13, %p1134_p7 }
 0x142   : > { %1144 = shalt.err (!%p1141_p0)
}
 0x143   : > { %971 = dma.vmem_to_hbm [thread:$0]  (%p1303_p4), %s1438_s7, 128, %s1436_s10, %s767_s11  }
 0x144 PF: > { %p983_p1 = scmp.ge.s32.totalorder %s1199_s22, 2  ;;  %s794_s5 = sand.u32 1, %s1179_s17  }
 0x145   : > { %s795_s6 = scalar_lea.sflag [#allocation4], %s794_s5 }
 0x146   : > { %p978_p2 = pnand %p983_p1, %p1310_p8 }
 0x148   : > { %1174 = dma.done.wait (!%p978_p2), %s795_s6, 128  }
 0x149   : > { %1176 = vsyncadd (!%p978_p2), %s795_s6, 4294967168  ;;  %s19_s22 = sadd.s32 1, %s1199_s22   ;;  %s1492_s17 = smov %s1183_s18 }
 0x14a   : > { %p16_p3 = scmp.ge.s32.totalorder %s19_s22, 4   ;;  %s1493_s18 = smov %s1187_s19 }
 0x14b   : > { %s1494_s19 = smov %s1316_s29  ;;  %s1495_s20 = smov %s1195_s21 }
 0x14c   : > { %s1496_s21 = smov %s1498_s24  ;;  %18 = sbr.rel (!%p16_p3) target bundleno = 7 (0x7), region = 79 }
 0x153   :  { %800 = vsyncpa [#allocation4], 1 }
 0x154   :  { %802 = vsyncpa [#allocation4 + $0x1], 1 }
 0x155   :  { %803 = vsyncpa [#allocation5], 1 }
 0x156   :  { %805 = vsyncpa [#allocation5 + $0x1], 1 }

</bundles_post_ra>
